<compile_context>
chip_gen: v5e
topology: v5e:2x2
jax: 0.10.0
libtpu: 0.0.40
codegen_flags: <defaults>
</compile_context>

<pallas_src>
import math

import jax
import jax.numpy as jnp
from jax.experimental import pallas as pl
from jax.experimental.pallas import tpu as pltpu


_VMEM_LIMIT = 32 * 1024 * 1024  # safe on v5e/v6e/v7x


def _pick_tile(n, candidates):
    """Largest candidate tile that divides n, else the full dimension."""
    for t in candidates:
        if n % t == 0:
            return t
    return n


# ---------------------------------------------------------------------------
# Kernel 1: tiled linear projection  y = x @ W_T    (W_T pre-transposed: (Din, Dout))
# ---------------------------------------------------------------------------
def _linear_kernel(x_ref, w_ref, o_ref, acc_ref):
    # x_ref: (1, tm, tk), w_ref: (tk, tn), o_ref: (1, tm, tn), acc: (tm, tn) f32
    @pl.when(pl.program_id(3) == 0)
    def _init():
        acc_ref[...] = jnp.zeros(acc_ref.shape, acc_ref.dtype)

    acc_ref[...] += jnp.dot(x_ref[0], w_ref[...],
                            preferred_element_type=jnp.float32)

    @pl.when(pl.program_id(3) == pl.num_programs(3) - 1)
    def _finalize():
        o_ref[0] = acc_ref[...].astype(o_ref.dtype)


def linear(x, w_t):
    """x: (B, S, Din), w_t: (Din, Dout) (already transposed) -> (B, S, Dout)."""
    B, S, Din = x.shape
    Dout = w_t.shape[1]
    tm = _pick_tile(S, (256, 128, 64, 32, 16, 8))
    tn = _pick_tile(Dout, (256, 128))
    tk = _pick_tile(Din, (512, 256, 128))
    grid = (B, S // tm, Dout // tn, Din // tk)

    itemsize = x.dtype.itemsize
    cost = pl.CostEstimate(
        flops=2 * B * S * Din * Dout,
        transcendentals=0,
        bytes_accessed=(x.size + w_t.size + B * S * Dout) * itemsize,
    )

    return pl.pallas_call(
        _linear_kernel,
        out_shape=jax.ShapeDtypeStruct((B, S, Dout), x.dtype),
        grid_spec=pltpu.PrefetchScalarGridSpec(
            num_scalar_prefetch=0,
            grid=grid,
            in_specs=[
                pl.BlockSpec((1, tm, tk), lambda b, i, j, k: (b, i, k)),
                pl.BlockSpec((tk, tn), lambda b, i, j, k: (k, j)),
            ],
            out_specs=pl.BlockSpec((1, tm, tn), lambda b, i, j, k: (b, i, j)),
            scratch_shapes=[pltpu.VMEM((tm, tn), jnp.float32)],
        ),
        compiler_params=pltpu.CompilerParams(
            dimension_semantics=("parallel", "parallel", "parallel", "arbitrary"),
            vmem_limit_bytes=_VMEM_LIMIT),
        cost_estimate=cost,
    )(x, w_t)


# ---------------------------------------------------------------------------
# Kernel 2: flash-style multi-head attention, heads packed on the lane axis.
#   softmax(q k^T / sqrt(hd) + bias) v   with online softmax over Sk tiles.
# ---------------------------------------------------------------------------
def _make_attention_kernel(n_heads, head_depth, has_bias):
    scale = 1.0 / math.sqrt(head_depth)

    def kernel(*refs):
        if has_bias:
            q_ref, k_ref, v_ref, b_ref, o_ref, m_ref, l_ref, acc_ref = refs
        else:
            q_ref, k_ref, v_ref, o_ref, m_ref, l_ref, acc_ref = refs
            b_ref = None

        j = pl.program_id(2)

        @pl.when(j == 0)
        def _init():
            m_ref[...] = jnp.full(m_ref.shape, -jnp.inf, dtype=jnp.float32)
            l_ref[...] = jnp.zeros(l_ref.shape, jnp.float32)
            acc_ref[...] = jnp.zeros(acc_ref.shape, jnp.float32)

        q = q_ref[0] * scale          # (tq, D)  scale folded into q (O(tq*D))
        k = k_ref[0]                  # (tk, D)
        v = v_ref[0]                  # (tk, D)
        bias = b_ref[0] if has_bias else None   # (tq, tk) float32 additive mask

        # Static loop over heads; each head is a lane-slice of the packed dim.
        for h in range(n_heads):
            lo = h * head_depth
            hi = lo + head_depth
            q_h = q[:, lo:hi]          # (tq, hd)
            k_h = k[:, lo:hi]          # (tk, hd)
            v_h = v[:, lo:hi]          # (tk, hd)

            # QK^T without an explicit transpose: contract on last dims.
            s = jax.lax.dot_general(
                q_h, k_h, (((1,), (1,)), ((), ())),
                preferred_element_type=jnp.float32)        # (tq, tk)
            if bias is not None:
                s = s + bias

            m_prev = m_ref[h]                              # (tq, 1)
            m_new = jnp.maximum(m_prev, jnp.max(s, axis=-1, keepdims=True))
            alpha = jnp.exp(m_prev - m_new)
            p = jnp.exp(s - m_new)                         # unnormalized probs
            l_ref[h] = alpha * l_ref[h] + jnp.sum(p, axis=-1, keepdims=True)
            acc_ref[h] = alpha * acc_ref[h] + jnp.dot(
                p.astype(v_h.dtype), v_h, preferred_element_type=jnp.float32)
            m_ref[h] = m_new

        @pl.when(j == pl.num_programs(2) - 1)
        def _finalize():
            # Deferred softmax normalization on the (tq, hd) output; single
            # lane-dense (tq, D) store of all heads.
            outs = []
            for h in range(n_heads):
                inv_l = pl.reciprocal(l_ref[h], approx=False)   # (tq, 1)
                outs.append(acc_ref[h] * inv_l)                 # (tq, hd)
            o_ref[0] = jnp.concatenate(outs, axis=-1).astype(o_ref.dtype)

    return kernel


def flash_mha_attention(q, k, v, bias, *, n_heads):
    """q: (B, Sq, D), k/v: (B, Sk, D), bias: None or (Bm, Sq, Sk) f32 additive.

    Returns (B, Sq, D) with heads packed along the last dim (same order as
    torch's transpose(1,2).view(B, Sq, d_model))."""
    B, Sq, D = q.shape
    Sk = k.shape[1]
    head_depth = D // n_heads
    tq = _pick_tile(Sq, (256, 128))
    tk = _pick_tile(Sk, (512, 256, 128))
    has_bias = bias is not None

    in_specs = [
        pl.BlockSpec((1, tq, D), lambda b, i, j: (b, i, 0)),
        pl.BlockSpec((1, tk, D), lambda b, i, j: (b, j, 0)),
        pl.BlockSpec((1, tk, D), lambda b, i, j: (b, j, 0)),
    ]
    inputs = [q, k, v]
    if has_bias:
        if bias.shape[0] == 1:
            bias_map = lambda b, i, j: (0, i, j)   # shared mask: no per-batch DMA
        else:
            bias_map = lambda b, i, j: (b, i, j)
        in_specs.append(pl.BlockSpec((1, tq, tk), bias_map))
        inputs.append(bias)

    itemsize = q.dtype.itemsize
    bytes_accessed = (q.size + k.size + v.size + B * Sq * D) * itemsize
    if has_bias:
        bytes_accessed += bias.size * bias.dtype.itemsize
    cost = pl.CostEstimate(
        flops=4 * B * n_heads * Sq * Sk * head_depth,   # QK^T + PV
        transcendentals=B * n_heads * Sq * Sk,
        bytes_accessed=bytes_accessed,
    )

    kernel = _make_attention_kernel(n_heads, head_depth, has_bias)

    return pl.pallas_call(
        kernel,
        out_shape=jax.ShapeDtypeStruct((B, Sq, D), q.dtype),
        grid_spec=pltpu.PrefetchScalarGridSpec(
            num_scalar_prefetch=0,
            grid=(B, Sq // tq, Sk // tk),
            in_specs=in_specs,
            out_specs=pl.BlockSpec((1, tq, D), lambda b, i, j: (b, i, 0)),
            scratch_shapes=[
                pltpu.VMEM((n_heads, tq, 1), jnp.float32),           # running max
                pltpu.VMEM((n_heads, tq, 1), jnp.float32),           # running sum
                pltpu.VMEM((n_heads, tq, head_depth), jnp.float32),  # accumulator
            ],
        ),
        compiler_params=pltpu.CompilerParams(
            dimension_semantics=("parallel", "parallel", "arbitrary"),
            vmem_limit_bytes=_VMEM_LIMIT),
        cost_estimate=cost,
    )(*inputs)


# ---------------------------------------------------------------------------
# MultiHeadAttention forward (glue in plain JAX: weight transpose, mask->bias)
# ---------------------------------------------------------------------------
def multi_head_attention(params, query, key, value, mask=None,
                         *, n_heads, d_model, compute_dtype=None):
    """params: dict of nn.Linear weights (d_out, d_in) for wq/wk/wv/w_out."""
    if compute_dtype is not None:
        # bf16 at the kernel boundary (v6e/v7x MXU); f32 accumulation kept.
        query = query.astype(compute_dtype)
        key = key.astype(compute_dtype)
        value = value.astype(compute_dtype)
        params = {n: p.astype(compute_dtype) for n, p in params.items()}

    B, Sq, _ = query.shape
    Sk = key.shape[1]

    # Pre-transpose weights ONCE outside the kernel -> kernel feeds MXU directly.
    wq_t = params["wq"].T
    wk_t = params["wk"].T
    wv_t = params["wv"].T
    wo_t = params["w_out"].T

    if (query is key) and (key is value):
        # Self-attention fast path: fused QKV projection with stacked weight.
        qkv = linear(query, jnp.concatenate([wq_t, wk_t, wv_t], axis=1))
        Q = qkv[..., :d_model]
        K = qkv[..., d_model:2 * d_model]
        V = qkv[..., 2 * d_model:]
    else:
        Q = linear(query, wq_t)     # (B, Sq, D)
        K = linear(key, wk_t)       # (B, Sk, D)
        V = linear(value, wv_t)     # (B, Sk, D)

    if mask is None:
        bias = None
    else:
        # Additive bias computed once: mask==1 -> -1e9 (matches masked_fill for softmax).
        m = jnp.asarray(mask, jnp.float32)
        m = jnp.broadcast_to(m, m.shape[:-2] + (Sq, Sk))
        m = m.reshape((-1,) + m.shape[-2:])          # (Bm, Sq, Sk), Bm in {1, B}
        assert m.shape[0] in (1, B), "mask batch dim must broadcast to batch"
        bias = m * jnp.float32(-1e9)

    # No split_heads transpose: heads are sliced inside the attention kernel and
    # the kernel output is already (B, Sq, d_model) with heads packed.
    attn = flash_mha_attention(Q, K, V, bias, n_heads=n_heads)
    out = linear(attn, wo_t)
    return out


# ---------------------------------------------------------------------------
# Pure-JAX reference (mirrors the PyTorch module) for the sanity check
# ---------------------------------------------------------------------------
def _reference(params, query, key, value, mask, n_heads, d_model):
    B, Sq, _ = query.shape
    Sk = key.shape[1]
    hd = d_model // n_heads
    Q = query @ params["wq"].T
    K = key @ params["wk"].T
    V = value @ params["wv"].T
    sh = lambda t, S: t.reshape(B, S, n_heads, hd).transpose(0, 2, 1, 3)
    Qh, Kh, Vh = sh(Q, Sq), sh(K, Sk), sh(V, Sk)
    qk = jnp.einsum("bhqd,bhkd->bhqk", Qh, Kh) / math.sqrt(hd)
    if mask is not None:
        qk = jnp.where(mask.reshape(B, 1, Sq, Sk) == 1.0, -1e9, qk)
    p = jax.nn.softmax(qk, axis=-1)
    a = jnp.einsum("bhqk,bhkd->bhqd", p, Vh)
    a = a.transpose(0, 2, 1, 3).reshape(B, Sq, d_model)
    return a @ params["w_out"].T


if __name__ == "__main__":
    batch, seq, d_model, n_heads = 2, 8, 32, 4

    key0 = jax.random.PRNGKey(0)
    ks = jax.random.split(key0, 8)

    params = {
        "wq":    0.05 * jax.random.normal(ks[0], (d_model, d_model), jnp.float32),
        "wk":    0.05 * jax.random.normal(ks[1], (d_model, d_model), jnp.float32),
        "wv":    0.05 * jax.random.normal(ks[2], (d_model, d_model), jnp.float32),
        "w_out": 0.05 * jax.random.normal(ks[3], (d_model, d_model), jnp.float32),
    }

    q_in = jax.random.normal(ks[4], (batch, seq, d_model), jnp.float32)
    k_in = jax.random.normal(ks[5], (batch, seq, d_model), jnp.float32)
    v_in = jax.random.normal(ks[6], (batch, seq, d_model), jnp.float32)
    # Float mask, 1.0 where masked (upper-triangular causal mask as example).
    mask = jnp.triu(jnp.ones((batch, seq, seq), jnp.float32), k=1)

    # Cross-attention-style call with mask.
    out = multi_head_attention(params, q_in, k_in, v_in, mask,
                               n_heads=n_heads, d_model=d_model)
    out = jax.block_until_ready(out)
    ref = _reference(params, q_in, k_in, v_in, mask, n_heads, d_model)
    assert out.shape == (batch, seq, d_model)
    assert jnp.allclose(out, ref, atol=1e-4, rtol=1e-4)

    # Self-attention fast path (fused QKV projection), no mask.
    out2 = multi_head_attention(params, q_in, q_in, q_in, None,
                                n_heads=n_heads, d_model=d_model)
    out2 = jax.block_until_ready(out2)
    ref2 = _reference(params, q_in, q_in, q_in, None, n_heads, d_model)
    assert jnp.allclose(out2, ref2, atol=1e-4, rtol=1e-4)

    print("KERNEL_OK")
</pallas_src>

<mosaic_0001>
module attributes {stable_mosaic.version = 11 : i64} {
  func.func @_linear_kernel(%arg0: i32, %arg1: i32, %arg2: i32, %arg3: i32, %arg4: memref<1x8x32xf32, #tpu.memory_space<vmem>>, %arg5: memref<32x32xf32, #tpu.memory_space<vmem>>, %arg6: memref<1x8x32xf32, #tpu.memory_space<vmem>>, %arg7: memref<8x32xf32, #tpu.memory_space<vmem>>) attributes {dimension_semantics = [#tpu.dimension_semantics<parallel>, #tpu.dimension_semantics<parallel>, #tpu.dimension_semantics<parallel>, #tpu.dimension_semantics<arbitrary>], iteration_bounds = array<i64: 2, 1, 1, 1>, scalar_prefetch = 0 : i64, scratch_operands = 1 : i64, tpu.core_type = #tpu.core_type<tc>, window_params = [{transform_indices = @transform_0, window_bounds = array<i64: 1, 8, 32>}, {transform_indices = @transform_1, window_bounds = array<i64: 32, 32>}, {transform_indices = @transform_2, window_bounds = array<i64: 1, 8, 32>}]} {
    %c0_i32 = arith.constant 0 : i32
    %0 = arith.cmpi eq, %arg3, %c0_i32 : i32
    %1 = arith.extui %0 : i1 to i32
    %c0_i32_0 = arith.constant 0 : i32
    %2 = arith.cmpi ne, %1, %c0_i32_0 : i32
    scf.if %2 {
      %cst_11 = arith.constant 0.000000e+00 : f32
      %13 = vector.broadcast %cst_11 : f32 to vector<8x32xf32>
      %c0_12 = arith.constant 0 : index
      %c0_13 = arith.constant 0 : index
      %14 = vector.load %arg7[%c0_12, %c0_13] : memref<8x32xf32, #tpu.memory_space<vmem>>, vector<8x32xf32>
      tpu.vector_store %arg7[%c0_12, %c0_13], %13 {strides = array<i32>} : memref<8x32xf32, #tpu.memory_space<vmem>>, vector<8x32xf32>,
    } else {
    }
    %c0 = arith.constant 0 : index
    %c0_1 = arith.constant 0 : index
    %3 = vector.load %arg7[%c0, %c0_1] : memref<8x32xf32, #tpu.memory_space<vmem>>, vector<8x32xf32>
    %c0_2 = arith.constant 0 : index
    %c0_3 = arith.constant 0 : index
    %c0_4 = arith.constant 0 : index
    %4 = vector.load %arg4[%c0_2, %c0_3, %c0_4] : memref<1x8x32xf32, #tpu.memory_space<vmem>>, vector<1x8x32xf32>
    %5 = vector.shape_cast %4 : vector<1x8x32xf32> to vector<8x32xf32>
    %c0_5 = arith.constant 0 : index
    %c0_6 = arith.constant 0 : index
    %6 = vector.load %arg5[%c0_5, %c0_6] : memref<32x32xf32, #tpu.memory_space<vmem>>, vector<32x32xf32>
    %cst = arith.constant dense<0.000000e+00> : vector<8x32xf32>
    %7 = tpu.matmul %5, %6, %cst {dimension_numbers = #tpu.dot_dimension_numbers<[1], [0], [0], [1], [0, 0, 1, 1], [], []>} : vector<8x32xf32>, vector<32x32xf32>, vector<8x32xf32> -> vector<8x32xf32>
    %8 = arith.addf %3, %7 : vector<8x32xf32>
    %c0_7 = arith.constant 0 : index
    %c0_8 = arith.constant 0 : index
    %9 = vector.load %arg7[%c0_7, %c0_8] : memref<8x32xf32, #tpu.memory_space<vmem>>, vector<8x32xf32>
    tpu.vector_store %arg7[%c0_7, %c0_8], %8 {strides = array<i32>} : memref<8x32xf32, #tpu.memory_space<vmem>>, vector<8x32xf32>,
    %c0_i32_9 = arith.constant 0 : i32
    %10 = arith.cmpi eq, %arg3, %c0_i32_9 : i32
    %11 = arith.extui %10 : i1 to i32
    %c0_i32_10 = arith.constant 0 : i32
    %12 = arith.cmpi ne, %11, %c0_i32_10 : i32
    scf.if %12 {
      %c0_11 = arith.constant 0 : index
      %c0_12 = arith.constant 0 : index
      %13 = vector.load %arg7[%c0_11, %c0_12] : memref<8x32xf32, #tpu.memory_space<vmem>>, vector<8x32xf32>
      %c0_13 = arith.constant 0 : index
      %c0_14 = arith.constant 0 : index
      %c0_15 = arith.constant 0 : index
      %14 = vector.load %arg6[%c0_13, %c0_14, %c0_15] : memref<1x8x32xf32, #tpu.memory_space<vmem>>, vector<1x8x32xf32>
      %15 = vector.shape_cast %14 : vector<1x8x32xf32> to vector<8x32xf32>
      %16 = vector.shape_cast %13 : vector<8x32xf32> to vector<1x8x32xf32>
      tpu.vector_store %arg6[%c0_13, %c0_14, %c0_15], %16 {strides = array<i32>} : memref<1x8x32xf32, #tpu.memory_space<vmem>>, vector<1x8x32xf32>,
    } else {
    }
    return
  }
  func.func @transform_0(%arg0: i32, %arg1: i32, %arg2: i32, %arg3: i32) -> (i32, i32, i32) {
    %c0_i32 = arith.constant 0 : i32
    return %arg0, %arg1, %arg3 : i32, i32, i32
  }
  func.func @transform_1(%arg0: i32, %arg1: i32, %arg2: i32, %arg3: i32) -> (i32, i32) {
    %c0_i32 = arith.constant 0 : i32
    return %arg3, %arg2 : i32, i32
  }
  func.func @transform_2(%arg0: i32, %arg1: i32, %arg2: i32, %arg3: i32) -> (i32, i32, i32) {
    %c0_i32 = arith.constant 0 : i32
    return %arg0, %arg1, %arg2 : i32, i32, i32
  }
}

</mosaic_0001>

<bundles_post_ra>
// kernel: tpu_custom_call.1
= control target key start
LH: loop header
LB: loop body
LE: loop exit
PB: predicated region body
PF: predicated region fallthrough
CT: control target
= control target key end

     0   :  { %7 = vsyncpa [#allocation4], 0  ;;  %s795_s0 = inlined_call_operand.hbm [shape: f32[2,8,32], index: 0, kind: input, shape index: {}]   ;;  %s796_s1 = inlined_call_operand.hbm [shape: f32[32,32], index: 1, kind: input, shape index: {}]   ;;  %s797_s2 = inlined_call_operand.hbm [shape: f32[2,8,32], index: 2, kind: output, shape index: {}]  }
   0x1   :  { %9 = vsyncpa [#allocation4 + $0x1], 0 }
   0x2   :  { %10 = vsyncpa [#allocation7], 0 }
   0x3   :  { %11 = vsyncpa [#allocation5], 0 }
   0x4   :  { %13 = vsyncpa [#allocation5 + $0x1], 0  ;;  %s648_s9 = smov 0   ;;  %s650_s10 = smov 0  }
   0x5   :  { %s652_s11 = smov 0   ;;  %s654_s12 = smov 0  }
   0x6   :  { %s656_s13 = smov 0   ;;  %s658_s14 = smov 0  }
   0x7 LB: > { %s389_s15 = sadd.s32 4294967295, %s627_s14   ;;  %p391_p0 = scmp.ge.s32.totalorder %s627_s14, 1  ;;  %s627_s14 = sphi %s658_s14, %s19_s14   ;;  %s623_s13 = sphi %s656_s13, %s808_s13   ;;  %s619_s12 = sphi %s654_s12, %s807_s12   ;;  %s615_s11 = sphi %s652_s11, %s806_s11   ;;  %s611_s10 = sphi %s650_s10, %s805_s10   ;;  %s607_s9 = sphi %s648_s9, %s804_s9  }
   0x8   : > { %p680_p1 = scmp.eq.s32.totalorder %s389_s15, 0  ;;  %p138_p2 = scmp.lt.s32.totalorder %s627_s14, 3 }
   0x9   : > { %s153_s19 = sshll.u32 %s796_s1, 4  ;;  %s629_s21 = smov [#allocation6]   ;;  %s154_s19 = int_to_ptr.hbm [resolvable:$true] %s153_s19 }
   0xa   : > { %p688_p3 = pnand %p391_p0, %p138_p2  ;;  %s155_s22 = sshll.u32 %s629_s21, 4  ;;  %s156_s22 = int_to_ptr.vmem [resolvable:$true] %s155_s22 }
   0xb   : > { %p393_p6 = scmp.ge.s32.totalorder %s627_s14, 2  ;;  %s630_s23 = smov 128  }
   0xc   : > { %p413_p4 = pneg %p688_p3  ;;  %s631_s24 = smov 8  }
   0xd   : > { %s390_s25 = sadd.s32 4294967294, %s627_s14   ;;  %s45_s26 = sadd.s32 1, %s623_s13 }
   0xe   : > { %p414_p5 = pnand %p413_p4, %p680_p1  ;;  %s56_s27 = sadd.s32 1, %s615_s11 }
   0xf   : > { %p47_p7 = scmp.ge.s32.totalorder %s45_s26, 2  ;;  %p63_p8 = scmp.ne.s32.totalorder %s615_s11, %s611_s10 }
  0x10   : > { %416 = dma.hbm_to_vmem [thread:$0]  (!%p414_p5), %s154_s19, 512, %s156_s22, [#allocation7], %s630_s23, %s630_s23, %s631_s24  }
  0x11   : > { %p64_p9 = scmp.eq.s32.totalorder %s627_s14, 0  ;;  %p69_p10 = scmp.ne.s32.totalorder %s611_s10, %s607_s9 }
  0x12   : > { %s810_s26 = smov (%p47_p7, %s45_s26), 0  ;;  %p125_p13 = scmp.eq.s32.totalorder %s389_s15, 1 }
  0x13   : > { %p707_p11 = por %p64_p9, %p63_p8  ;;  %p713_p12 = por %p680_p1, %p69_p10 }
  0x14   : > { %s49_s30 = ssub.s32 %s623_s13, %s810_s26  ;;  %p131_p2 = scmp.eq.s32.totalorder %s390_s25, 1 }
  0x15   : > { %p54_p0 = scmp.eq.s32.totalorder %s49_s30, 0  ;;  %p719_p4 = por %p125_p13, %p63_p8 }
  0x16   : > { %p426_p5 = scmp.lt.s32.totalorder %s627_s14, 2  ;;  %p727_p7 = por %p131_p2, %p69_p10 }
  0x17   : > { %s725_s4 = scalar_select %p54_p0, %s615_s11, %s56_s27  }
  0x18   : > { %s169_s6 = sand.u32 1, %s615_s11   ;;  %s395_s8 = sshll.u32 %s623_s13, 3 }
  0x19   : > { %s394_s7 = sshll.u32 %s169_s6, 3  ;;  %s179_s15 = scalar_lea.hbm %s795_s0, %s395_s8 }
  0x1a   : > { %s173_s19 = scalar_lea.vmem [#allocation3], %s394_s7  ;;  %s181_s22 = sshll.u32 %s179_s15, 4  ;;  %s182_s22 = int_to_ptr.hbm [resolvable:$true] %s181_s22 }
  0x1b   : > { %s183_s21 = sshll.u32 %s173_s19, 4  ;;  %p418_p8 = pnand %p426_p5, %p707_p11  ;;  %s184_s21 = int_to_ptr.vmem [resolvable:$true] %s183_s21 }
  0x1c   : > { %s170_s23 = scalar_lea.sflag [#allocation4], %s169_s6  ;;  %192 = sbr.rel (%p688_p3) target bundleno = 183 (0xb7), region = 28 }
  0x1d   : > { %420 = dma.hbm_to_vmem [thread:$0]  (!%p418_p8), %s182_s22, 128, %s184_s21, %s170_s23  }
  0x1e   : > { %s741_s24 = sand.u32 (!%p688_p3), 1, %s611_s10  }
  0x1f   : > { %s397_s25 = sshll.u32 (!%p688_p3), %s741_s24, 3  ;;  %s195_s27 = scalar_lea.sflag (!%p688_p3), [#allocation4], %s741_s24 }
  0x20   : > { %s198_s30 = scalar_lea.vmem (!%p688_p3), [#allocation3], %s397_s25 }
  0x21   : > { %594 = dma.done.wait (%p713_p12), %s195_s27, 128  }
  0x22   : > { %596 = vsyncadd (%p713_p12), %s195_s27, 4294967168 }
  0x23   : > { %598 = dma.done.wait (%p680_p1), [#allocation7], 512  }
  0x24   : > { %600 = vsyncadd (%p680_p1), [#allocation7], 4294966784  ;;  %vm230_vm0 = vcmask 261120   ;;  %v632_v0 = vmov 0.0   ;;  %v237_v1 = vld [vmem:[#allocation6 + $0x18] sm:$0xff]  ;;  %v236_v2 = vld [vmem:[#allocation6 + $0x10] sm:$0xff] }
  0x25   : > { %231 = vst.msk [vmem:[#allocation2] sm:$0xff] %vm230_vm0, %v632_v0  ;;  %254 = vmatpush.msra.mxu0 %v237_v1  ;;  %v235_v3 = vld [vmem:[#allocation6 + $0x8] sm:$0xff]  ;;  %v234_v4 = vld [vmem:[#allocation6] sm:$0xff]  ;;  %v233_v5 = vld [vmem:[%s198_s30] sm:$0xff]  ;;  %s402_s16 = sshll.u32 %s619_s12, 3  ;;  %s224_s6 = scalar_lea.vmem [#allocation8], %s397_s25 }
  0x26   : > { %s282_s29 = scalar_lea.hbm %s797_s2, %s402_s16  ;;  %s284_s7 = sshll.u32 %s224_s6, 4  ;;  %s285_s7 = int_to_ptr.vmem [resolvable:$true] %s284_s7 }
  0x27   : > { %255 = vmatpush.msra.mxu0 %v236_v2  ;;  %s286_s8 = sshll.u32 %s282_s29, 4  ;;  %s270_s17 = scalar_lea.sflag [#allocation5], %s741_s24  ;;  %s287_s8 = int_to_ptr.hbm [resolvable:$true] %s286_s8 }
  0x28   : > { %s555_s18 = sshra.s32 %s287_s8, 4  ;;  %s561_s21 = scalar_lea.hbm %s797_s2, 16  ;;  %s556_s18 = int_to_ptr.hbm [resolvable:$true] %s555_s18 }
  0x29   : > { %256 = vmatpush.msra.mxu0 %v235_v3  ;;  %s557_s12 = scalar_lea.hbm %s556_s18, 8  ;;  %p562_p10 = scmp.lt.s32.totalorder %s556_s18, %s797_s2 }
  0x2a   : > { %p558_p1 = scmp.ne.s32.totalorder %s556_s18, %s557_s12  ;;  %p563_p11 = scmp.lt.s32.totalorder %s561_s21, %s557_s12 }
  0x2b   : > { %257 = vmatpush.msra.mxu0 %v234_v4 }
  0x2c   : > { %400 = vmatmul.msk.f32.vlgmr.msra.gmra.mxu0 %vm230_vm0, %v233_v5  ;;  %v232_v6 = vld [vmem:[#allocation2] sm:$0xff]  ;;  %p559_p3 = pnand %p558_p1, %p719_p4  ;;  %p564_p12 = por %p563_p11, %p562_p10 }
  0x2e   : > { %p560_p9 = pneg %p559_p3 }
  0x30   : > { %p565_p13 = pnand %p564_p12, %p560_p9 }
  0xa9   : > { %v259_v7 = vpop.f32.mrf.mxu0 }
  0xaa   : > { %v262_v8 = vadd.f32 %v259_v7, %v232_v6 }
  0xac   : > { %263 = vst.msk [vmem:[#allocation2] sm:$0xff] %vm230_vm0, %v262_v8 }
  0xb3   : > { %v267_v9 = vld [vmem:[#allocation2] sm:$0xff] }
  0xb4   : > { %268 = vst.msk [vmem:[%s224_s6] sm:$0xff] %vm230_vm0, %v267_v9 }
  0xb5   : > { %568 = shalt.err (!%p565_p13)
}
  0xb6   : > { %411 = dma.vmem_to_hbm [thread:$0]  (%p719_p4), %s285_s7, 128, %s287_s8, %s270_s17  }
  0xb7 PF: > { %s298_s24 = sand.u32 1, %s607_s9   ;;  %p422_p0 = pnand %p393_p6, %p727_p7 }
  0xb8   : > { %s299_s25 = scalar_lea.sflag [#allocation5], %s298_s24 }
  0xb9   : > { %p423_p2 = pneg %p422_p0 }
  0xbb   : > { %602 = dma.done.wait (%p423_p2), %s299_s25, 128  }
  0xbc   : > { %604 = vsyncadd (%p423_p2), %s299_s25, 4294967168  ;;  %s19_s14 = sadd.s32 1, %s627_s14   ;;  %s804_s9 = smov %s611_s10 }
  0xbd   : > { %p16_p5 = scmp.ge.s32.totalorder %s19_s14, 4   ;;  %s805_s10 = smov %s615_s11 }
  0xbe   : > { %s806_s11 = smov %s725_s4  ;;  %s807_s12 = smov %s623_s13 }
  0xbf   : > { %s808_s13 = smov %s810_s26  ;;  %18 = sbr.rel (!%p16_p5) target bundleno = 7 (0x7), region = 86 }
  0xc4   :  { %305 = vsyncpa [#allocation4], 1 }
  0xc5   :  { %307 = vsyncpa [#allocation4 + $0x1], 1 }
  0xc6   :  { %308 = vsyncpa [#allocation7], 1 }
  0xc7   :  { %309 = vsyncpa [#allocation5], 1 }
  0xc8   :  { %311 = vsyncpa [#allocation5 + $0x1], 1 }

</bundles_post_ra>
